<compile_context>
chip_gen: v5e
topology: v5e:2x2
jax: 0.10.0
libtpu: 0.0.40
codegen_flags: <defaults>
</compile_context>

<pallas_src>
import functools

import jax
import jax.numpy as jnp
from jax.experimental import pallas as pl
from jax.experimental.pallas import tpu as pltpu

EPS = 1e-5
_LANE = 128


def _round_up(x, m):
    return (x + m - 1) // m * m


def _stats_kernel(x_ref, gamma_ref, beta_ref, scale_ref, shift_ref,
                  acc_sum, acc_sq, *, count):
    """Accumulate per-channel sum / sum-of-squares; finalize scale/shift."""
    t = pl.program_id(0)

    @pl.when(t == 0)
    def _():
        acc_sum[...] = jnp.zeros_like(acc_sum)
        acc_sq[...] = jnp.zeros_like(acc_sq)

    x = x_ref[...].astype(jnp.float32)           # (N, C, TL)
    # Single pass per tile: fold the batch axis on the VPU, keep the lane axis
    # intact so the cross-lane (XLU) reduce happens exactly once at finalize.
    acc_sum[...] += jnp.sum(x, axis=0)           # (C, TL)
    acc_sq[...] += jnp.sum(x * x, axis=0)        # (C, TL)

    @pl.when(t == pl.num_programs(0) - 1)
    def _():
        inv_count = 1.0 / count
        s = jnp.sum(acc_sum[...], axis=1, keepdims=True)    # (C, 1)
        sq = jnp.sum(acc_sq[...], axis=1, keepdims=True)    # (C, 1)
        mean = s * inv_count
        var = sq * inv_count - mean * mean                  # biased variance
        inv_std = jax.lax.rsqrt(var + EPS)
        # fold gamma/beta into per-channel affine: y = x * scale + shift
        scale = gamma_ref[...] * inv_std
        scale_ref[...] = scale
        shift_ref[...] = beta_ref[...] - mean * scale


def _norm_kernel(x_ref, scale_ref, shift_ref, o_ref):
    """Elementwise normalize pass: y = x * scale[c] + shift[c]."""
    x = x_ref[...].astype(jnp.float32)                       # (N, C, TL)
    scale = scale_ref[...][None, :, :]                       # (1, C, 1)
    shift = shift_ref[...][None, :, :]                       # (1, C, 1)
    o_ref[...] = (x * scale + shift).astype(o_ref.dtype)


def batchnorm2d(x_nchw: jax.Array, gamma: jax.Array, beta: jax.Array,
                *, lane_tile: int = 512) -> jax.Array:
    """BatchNorm2d forward with batch statistics (torch training-mode forward)."""
    n, c, h, w = x_nchw.shape
    L = h * w

    # Lane tile: multiple of 128, capped by lane_tile so the double-buffered
    # (N, C, TL) f32 blocks stay well inside VMEM on every TPU generation.
    tl = min(_round_up(L, _LANE), lane_tile)
    Lp = _round_up(L, tl)
    num_tiles = Lp // tl

    x3 = x_nchw.reshape(n, c, L)                 # free reshape of NCHW
    if Lp != L:
        # zero padding leaves sum / sum-of-squares unchanged
        x3 = jnp.pad(x3, ((0, 0), (0, 0), (0, Lp - L)))

    gamma_c1 = gamma.reshape(c, 1).astype(jnp.float32)
    beta_c1 = beta.reshape(c, 1).astype(jnp.float32)
    count = float(n * L)                         # true per-channel element count

    # ---- pass 1: per-channel statistics -> (scale, shift) -------------------
    scale, shift = pl.pallas_call(
        functools.partial(_stats_kernel, count=count),
        out_shape=(jax.ShapeDtypeStruct((c, 1), jnp.float32),
                   jax.ShapeDtypeStruct((c, 1), jnp.float32)),
        grid_spec=pltpu.PrefetchScalarGridSpec(
            num_scalar_prefetch=0,
            grid=(num_tiles,),
            in_specs=[
                pl.BlockSpec((n, c, tl), lambda t: (0, 0, t)),
                pl.BlockSpec((c, 1), lambda t: (0, 0)),   # resident, DMA'd once
                pl.BlockSpec((c, 1), lambda t: (0, 0)),
            ],
            out_specs=(
                pl.BlockSpec((c, 1), lambda t: (0, 0)),
                pl.BlockSpec((c, 1), lambda t: (0, 0)),
            ),
            scratch_shapes=[
                pltpu.VMEM((c, tl), jnp.float32),
                pltpu.VMEM((c, tl), jnp.float32),
            ],
        ),
        compiler_params=pltpu.CompilerParams(
            dimension_semantics=("arbitrary",)),     # reduction axis
    )(x3, gamma_c1, beta_c1)

    # ---- pass 2: normalize, tile-parallel (uses both TCs on v7x) ------------
    y3 = pl.pallas_call(
        _norm_kernel,
        out_shape=jax.ShapeDtypeStruct((n, c, Lp), x_nchw.dtype),
        grid_spec=pltpu.PrefetchScalarGridSpec(
            num_scalar_prefetch=0,
            grid=(num_tiles,),
            in_specs=[
                pl.BlockSpec((n, c, tl), lambda t: (0, 0, t)),
                pl.BlockSpec((c, 1), lambda t: (0, 0)),
                pl.BlockSpec((c, 1), lambda t: (0, 0)),
            ],
            out_specs=pl.BlockSpec((n, c, tl), lambda t: (0, 0, t)),
        ),
        compiler_params=pltpu.CompilerParams(
            dimension_semantics=("parallel",)),
    )(x3, scale, shift)

    if Lp != L:
        y3 = y3[:, :, :L]
    return y3.reshape(n, c, h, w)                # free reshape back to NCHW


if __name__ == "__main__":
    key = jax.random.PRNGKey(0)
    # Input consistent with BatchNorm2d(3): NCHW with C=3
    x = jax.random.normal(key, (2, 3, 16, 16), dtype=jnp.float32)

    # torch.nn.BatchNorm2d defaults: weight (gamma) = ones, bias (beta) = zeros
    gamma = jnp.ones((3,), dtype=jnp.float32)
    beta = jnp.zeros((3,), dtype=jnp.float32)

    out = batchnorm2d(x, gamma, beta)
    jax.block_until_ready(out)

    # reference: pure-JAX training-mode BN (batch stats, biased variance)
    mean = jnp.mean(x, axis=(0, 2, 3), keepdims=True)
    var = jnp.mean((x - mean) ** 2, axis=(0, 2, 3), keepdims=True)
    ref = (x - mean) / jnp.sqrt(var + EPS) * gamma.reshape(1, 3, 1, 1) \
        + beta.reshape(1, 3, 1, 1)
    assert jnp.allclose(out, ref, atol=1e-4, rtol=1e-5)

    print("KERNEL_OK")
</pallas_src>

<mosaic_0001>
module attributes {stable_mosaic.version = 11 : i64} {
  func.func @_stats_kernel(%arg0: i32, %arg1: memref<2x3x256xf32, #tpu.memory_space<vmem>>, %arg2: memref<3x1xf32, #tpu.memory_space<vmem>>, %arg3: memref<3x1xf32, #tpu.memory_space<vmem>>, %arg4: memref<3x1xf32, #tpu.memory_space<vmem>>, %arg5: memref<3x1xf32, #tpu.memory_space<vmem>>, %arg6: memref<3x256xf32, #tpu.memory_space<vmem>>, %arg7: memref<3x256xf32, #tpu.memory_space<vmem>>) attributes {dimension_semantics = [#tpu.dimension_semantics<arbitrary>], iteration_bounds = array<i64: 1>, scalar_prefetch = 0 : i64, scratch_operands = 2 : i64, tpu.core_type = #tpu.core_type<tc>, window_params = [{transform_indices = @transform_0, window_bounds = array<i64: 2, 3, 256>}, {pipeline_mode = #tpu.pipeline_mode<synchronous>, transform_indices = @transform_1, window_bounds = array<i64: 3, 1>}, {pipeline_mode = #tpu.pipeline_mode<synchronous>, transform_indices = @transform_2, window_bounds = array<i64: 3, 1>}, {pipeline_mode = #tpu.pipeline_mode<synchronous>, transform_indices = @transform_3, window_bounds = array<i64: 3, 1>}, {pipeline_mode = #tpu.pipeline_mode<synchronous>, transform_indices = @transform_4, window_bounds = array<i64: 3, 1>}]} {
    %c0_i32 = arith.constant 0 : i32
    %0 = arith.cmpi eq, %arg0, %c0_i32 : i32
    %1 = arith.extui %0 : i1 to i32
    %c0_i32_0 = arith.constant 0 : i32
    %2 = arith.cmpi ne, %1, %c0_i32_0 : i32
    scf.if %2 {
      %cst_14 = arith.constant 0.000000e+00 : f32
      %16 = vector.broadcast %cst_14 : f32 to vector<3x256xf32>
      %c0_15 = arith.constant 0 : index
      %c0_16 = arith.constant 0 : index
      %17 = vector.load %arg6[%c0_15, %c0_16] : memref<3x256xf32, #tpu.memory_space<vmem>>, vector<3x256xf32>
      tpu.vector_store %arg6[%c0_15, %c0_16], %16 {strides = array<i32>} : memref<3x256xf32, #tpu.memory_space<vmem>>, vector<3x256xf32>,
      %cst_17 = arith.constant 0.000000e+00 : f32
      %18 = vector.broadcast %cst_17 : f32 to vector<3x256xf32>
      %c0_18 = arith.constant 0 : index
      %c0_19 = arith.constant 0 : index
      %19 = vector.load %arg7[%c0_18, %c0_19] : memref<3x256xf32, #tpu.memory_space<vmem>>, vector<3x256xf32>
      tpu.vector_store %arg7[%c0_18, %c0_19], %18 {strides = array<i32>} : memref<3x256xf32, #tpu.memory_space<vmem>>, vector<3x256xf32>,
    } else {
    }
    %c0 = arith.constant 0 : index
    %c0_1 = arith.constant 0 : index
    %c0_2 = arith.constant 0 : index
    %3 = vector.load %arg1[%c0, %c0_1, %c0_2] : memref<2x3x256xf32, #tpu.memory_space<vmem>>, vector<2x3x256xf32>
    %c0_3 = arith.constant 0 : index
    %c0_4 = arith.constant 0 : index
    %4 = vector.load %arg6[%c0_3, %c0_4] : memref<3x256xf32, #tpu.memory_space<vmem>>, vector<3x256xf32>
    %cst = arith.constant dense<0.000000e+00> : vector<3x256xf32>
    %5 = vector.multi_reduction <add>, %3, %cst [0] : vector<2x3x256xf32> to vector<3x256xf32>
    %6 = arith.addf %4, %5 : vector<3x256xf32>
    %c0_5 = arith.constant 0 : index
    %c0_6 = arith.constant 0 : index
    %7 = vector.load %arg6[%c0_5, %c0_6] : memref<3x256xf32, #tpu.memory_space<vmem>>, vector<3x256xf32>
    tpu.vector_store %arg6[%c0_5, %c0_6], %6 {strides = array<i32>} : memref<3x256xf32, #tpu.memory_space<vmem>>, vector<3x256xf32>,
    %c0_7 = arith.constant 0 : index
    %c0_8 = arith.constant 0 : index
    %8 = vector.load %arg7[%c0_7, %c0_8] : memref<3x256xf32, #tpu.memory_space<vmem>>, vector<3x256xf32>
    %9 = arith.mulf %3, %3 : vector<2x3x256xf32>
    %cst_9 = arith.constant dense<0.000000e+00> : vector<3x256xf32>
    %10 = vector.multi_reduction <add>, %9, %cst_9 [0] : vector<2x3x256xf32> to vector<3x256xf32>
    %11 = arith.addf %8, %10 : vector<3x256xf32>
    %c0_10 = arith.constant 0 : index
    %c0_11 = arith.constant 0 : index
    %12 = vector.load %arg7[%c0_10, %c0_11] : memref<3x256xf32, #tpu.memory_space<vmem>>, vector<3x256xf32>
    tpu.vector_store %arg7[%c0_10, %c0_11], %11 {strides = array<i32>} : memref<3x256xf32, #tpu.memory_space<vmem>>, vector<3x256xf32>,
    %c0_i32_12 = arith.constant 0 : i32
    %13 = arith.cmpi eq, %arg0, %c0_i32_12 : i32
    %14 = arith.extui %13 : i1 to i32
    %c0_i32_13 = arith.constant 0 : i32
    %15 = arith.cmpi ne, %14, %c0_i32_13 : i32
    scf.if %15 {
      %c0_14 = arith.constant 0 : index
      %c0_15 = arith.constant 0 : index
      %16 = vector.load %arg6[%c0_14, %c0_15] : memref<3x256xf32, #tpu.memory_space<vmem>>, vector<3x256xf32>
      %cst_16 = arith.constant dense<0.000000e+00> : vector<3xf32>
      %17 = vector.multi_reduction <add>, %16, %cst_16 [1] : vector<3x256xf32> to vector<3xf32>
      %18 = vector.shape_cast %17 : vector<3xf32> to vector<3x1xf32>
      %c0_17 = arith.constant 0 : index
      %c0_18 = arith.constant 0 : index
      %19 = vector.load %arg7[%c0_17, %c0_18] : memref<3x256xf32, #tpu.memory_space<vmem>>, vector<3x256xf32>
      %cst_19 = arith.constant dense<0.000000e+00> : vector<3xf32>
      %20 = vector.multi_reduction <add>, %19, %cst_19 [1] : vector<3x256xf32> to vector<3xf32>
      %21 = vector.shape_cast %20 : vector<3xf32> to vector<3x1xf32>
      %cst_20 = arith.constant 0.001953125 : f32
      %22 = vector.broadcast %cst_20 : f32 to vector<3x1xf32>
      %23 = arith.mulf %18, %22 : vector<3x1xf32>
      %cst_21 = arith.constant 0.001953125 : f32
      %24 = vector.broadcast %cst_21 : f32 to vector<3x1xf32>
      %25 = arith.mulf %21, %24 : vector<3x1xf32>
      %26 = arith.mulf %23, %23 : vector<3x1xf32>
      %27 = arith.subf %25, %26 : vector<3x1xf32>
      %cst_22 = arith.constant 9.99999974E-6 : f32
      %28 = vector.broadcast %cst_22 : f32 to vector<3x1xf32>
      %29 = arith.addf %27, %28 : vector<3x1xf32>
      %30 = math.rsqrt %29 : vector<3x1xf32>
      %c0_23 = arith.constant 0 : index
      %c0_24 = arith.constant 0 : index
      %31 = vector.load %arg2[%c0_23, %c0_24] : memref<3x1xf32, #tpu.memory_space<vmem>>, vector<3x1xf32>
      %32 = arith.mulf %31, %30 : vector<3x1xf32>
      %c0_25 = arith.constant 0 : index
      %c0_26 = arith.constant 0 : index
      %33 = vector.load %arg4[%c0_25, %c0_26] : memref<3x1xf32, #tpu.memory_space<vmem>>, vector<3x1xf32>
      tpu.vector_store %arg4[%c0_25, %c0_26], %32 {strides = array<i32>} : memref<3x1xf32, #tpu.memory_space<vmem>>, vector<3x1xf32>,
      %c0_27 = arith.constant 0 : index
      %c0_28 = arith.constant 0 : index
      %34 = vector.load %arg3[%c0_27, %c0_28] : memref<3x1xf32, #tpu.memory_space<vmem>>, vector<3x1xf32>
      %35 = arith.mulf %23, %32 : vector<3x1xf32>
      %36 = arith.subf %34, %35 : vector<3x1xf32>
      %c0_29 = arith.constant 0 : index
      %c0_30 = arith.constant 0 : index
      %37 = vector.load %arg5[%c0_29, %c0_30] : memref<3x1xf32, #tpu.memory_space<vmem>>, vector<3x1xf32>
      tpu.vector_store %arg5[%c0_29, %c0_30], %36 {strides = array<i32>} : memref<3x1xf32, #tpu.memory_space<vmem>>, vector<3x1xf32>,
    } else {
    }
    return
  }
  func.func @transform_0(%arg0: i32) -> (i32, i32, i32) {
    %c0_i32 = arith.constant 0 : i32
    %c0_i32_0 = arith.constant 0 : i32
    %c0_i32_1 = arith.constant 0 : i32
    return %c0_i32, %c0_i32_0, %arg0 : i32, i32, i32
  }
  func.func @transform_1(%arg0: i32) -> (i32, i32) {
    %c0_i32 = arith.constant 0 : i32
    %c0_i32_0 = arith.constant 0 : i32
    %c0_i32_1 = arith.constant 0 : i32
    return %c0_i32, %c0_i32_0 : i32, i32
  }
  func.func @transform_2(%arg0: i32) -> (i32, i32) {
    %c0_i32 = arith.constant 0 : i32
    %c0_i32_0 = arith.constant 0 : i32
    %c0_i32_1 = arith.constant 0 : i32
    return %c0_i32, %c0_i32_0 : i32, i32
  }
  func.func @transform_3(%arg0: i32) -> (i32, i32) {
    %c0_i32 = arith.constant 0 : i32
    %c0_i32_0 = arith.constant 0 : i32
    %c0_i32_1 = arith.constant 0 : i32
    return %c0_i32, %c0_i32_0 : i32, i32
  }
  func.func @transform_4(%arg0: i32) -> (i32, i32) {
    %c0_i32 = arith.constant 0 : i32
    %c0_i32_0 = arith.constant 0 : i32
    %c0_i32_1 = arith.constant 0 : i32
    return %c0_i32, %c0_i32_0 : i32, i32
  }
}

</mosaic_0001>

<bundles_post_ra>
// kernel: tpu_custom_call.1
= control target key start
LH: loop header
LB: loop body
LE: loop exit
PB: predicated region body
PF: predicated region fallthrough
CT: control target
= control target key end

     0   :  { %v143_v0 = vmov 0.0   ;;  %vm38_vm0 = vcmask 1042432   ;;  %vm48_vm1 = vcmask 1043456   ;;  %vm126_vm5 = vcmask 2048   ;;  %s201_s0 = inlined_call_operand.vmem [shape: f32[2,3,256], index: 0, kind: input, shape index: {}]   ;;  %s202_s1 = inlined_call_operand.vmem [shape: f32[3,1], index: 1, kind: input, shape index: {}]   ;;  %s203_s2 = inlined_call_operand.vmem [shape: f32[3,1], index: 2, kind: input, shape index: {}]   ;;  %s204_s3 = inlined_call_operand.vmem [shape: f32[3,1], index: 3, kind: output, shape index: {0}]   ;;  %s205_s4 = inlined_call_operand.vmem [shape: f32[3,1], index: 4, kind: output, shape index: {1}]  }
   0x1   :  { %20 = vst [vmem:[#allocation2] sm:$0x77] %v143_v0  ;;  %v22_v1 = vld [vmem:[%s201_s0] sm:$0x77]  ;;  %v23_v2 = vld [vmem:[%s201_s0 + $0x8] sm:$0x77] }
   0x2   :  { %21 = vst [vmem:[#allocation3] sm:$0x77] %v143_v0  ;;  %v54_v3 = vmul.f32 %v22_v1, %v22_v1  ;;  %v55_v4 = vmul.f32 %v23_v2, %v23_v2  ;;  %v124_v57 = vld [vmem:[%s202_s1] sm:$0x7] }
   0x3   :  { %27 = vst [vmem:[#allocation1] ss:$2 sm:$0xff] %v22_v1  ;;  %v128_v61 = vld [vmem:[%s203_s2] sm:$0x7] }
   0x4   :  { %31 = vst [vmem:[#allocation1 + $0x10] ss:$2 sm:$0xff] %v23_v2 }
   0x8   :  { %v24_v15 = vld [vmem:[#allocation2] sm:$0x77] }
   0x9   :  { %v53_v29 = vld [vmem:[#allocation3] sm:$0x77] }
   0xa   :  { %v28_v5 = vld.sshfl [vmem:[#allocation1] sm:$0xff pattern:$0x75316420]  ;;  %v29_v6 = vld.sshfl [vmem:[#allocation1 + $0x8] sm:$0xff pattern:$0x75316420] }
   0xb   :  { %v32_v7 = vld.sshfl [vmem:[#allocation1 + $0x10] sm:$0xff pattern:$0x75316420]  ;;  %v33_v8 = vld.sshfl [vmem:[#allocation1 + $0x18] sm:$0xff pattern:$0x75316420] }
   0xc   :  { %v39_v9 = vsel %vm38_vm0, %v28_v5, 0.0  ;;  %v40_v10 = vsel %vm38_vm0, %v32_v7, 0.0  ;;  %v42_v11 = vsel %vm38_vm0, %v29_v6, 0.0  ;;  %v43_v12 = vsel %vm38_vm0, %v33_v8, 0.0  ;;  %58 = vst [vmem:[#allocation1] ss:$2 sm:$0xff] %v54_v3 }
   0xd   :  { %v41_v13 = vadd.f32 %v40_v10, %v39_v9  ;;  %v44_v14 = vadd.f32 %v43_v12, %v42_v11  ;;  %62 = vst [vmem:[#allocation1 + $0x10] ss:$2 sm:$0xff] %v55_v4 }
   0xf   :  { %v47_v16 = vrot.slane %v44_v14, 4 }
  0x11   :  { %v49_v17 = vsel %vm48_vm1, %v41_v13, %v47_v16 }
  0x12   :  { %v51_v18 = vadd.f32 %v49_v17, %v24_v15 }
  0x13   :  { %v59_v19 = vld.sshfl [vmem:[#allocation1] sm:$0xff pattern:$0x75316420]  ;;  %v60_v20 = vld.sshfl [vmem:[#allocation1 + $0x8] sm:$0xff pattern:$0x75316420] }
  0x14   :  { %52 = vst [vmem:[#allocation2] sm:$0x77] %v51_v18  ;;  %v63_v21 = vld.sshfl [vmem:[#allocation1 + $0x10] sm:$0xff pattern:$0x75316420]  ;;  %v69_v22 = vsel %vm38_vm0, %v59_v19, 0.0 }
  0x15   :  { %v64_v23 = vld.sshfl [vmem:[#allocation1 + $0x18] sm:$0xff pattern:$0x75316420]  ;;  %v70_v24 = vsel %vm38_vm0, %v63_v21, 0.0  ;;  %v72_v25 = vsel %vm38_vm0, %v60_v20, 0.0 }
  0x16   :  { %v73_v26 = vsel %vm38_vm0, %v64_v23, 0.0  ;;  %v71_v27 = vadd.f32 %v70_v24, %v69_v22 }
  0x17   :  { %v74_v28 = vadd.f32 %v73_v26, %v72_v25 }
  0x19   :  { %v77_v30 = vrot.slane %v74_v28, 4 }
  0x1b   :  { %v78_v31 = vsel %vm48_vm1, %v71_v27, %v77_v30  ;;  %v85_v32 = vld [vmem:[#allocation2] sm:$0x77] }
  0x1c   :  { %v80_v33 = vadd.f32 %v78_v31, %v53_v29  ;;  %87 = vst [vmem:[#allocation1] ss:$2 sm:$0xff] %v85_v32 }
  0x1e   :  { %81 = vst [vmem:[#allocation3] sm:$0x77] %v80_v33 }
  0x23   :  { %v88_v34 = vld.sshfl [vmem:[#allocation1] sm:$0xff pattern:$0x75316420]  ;;  %v89_v35 = vld.sshfl [vmem:[#allocation1 + $0x8] sm:$0xff pattern:$0x75316420] }
  0x24   :  { %v92_v36 = vsel %vm38_vm0, %v88_v34, 0.0  ;;  %v93_v37 = vsel %vm38_vm0, %v89_v35, 0.0 }
  0x25   :  { %v94_v38 = vadd.f32 %v93_v37, %v92_v36  ;;  %v97_v39 = vld [vmem:[#allocation3] sm:$0x77] }
  0x26   :  { %99 = vst [vmem:[#allocation1] ss:$2 sm:$0xff] %v97_v39 }
  0x27   :  { %95 = vadd.xlane.f32.xlu0 %v94_v38 }
  0x2d   :  { %v100_v40 = vld.sshfl [vmem:[#allocation1] sm:$0xff pattern:$0x75316420]  ;;  %v101_v41 = vld.sshfl [vmem:[#allocation1 + $0x8] sm:$0xff pattern:$0x75316420] }
  0x2e   :  { %v104_v42 = vsel %vm38_vm0, %v100_v40, 0.0  ;;  %v105_v43 = vsel %vm38_vm0, %v101_v41, 0.0 }
  0x2f   :  { %v106_v44 = vadd.f32 %v105_v43, %v104_v42 }
  0x31   :  { %107 = vadd.xlane.f32.xlu0 %v106_v44 }
  0x9a   :  { %v96_v45 = vpop.xlane.xlu0 %95 }
  0x9b   :  { %v109_v46 = vmul.f32 0.001953125, %v96_v45 }
  0x9d   :  { %v111_v48 = vmul.f32 %v109_v46, %v109_v46 }
  0xa4   :  { %v108_v47 = vpop.xlane.xlu0 %107 }
  0xa5   :  { %v110_v49 = vmul.f32 0.001953125, %v108_v47 }
  0xa7   :  { %v112_v50 = vsub.f32 %v110_v49, %v111_v48 }
  0xa9   :  { %v113_v51 = vadd.f32 1e-05, %v112_v50 }
  0xab   :  { %141 = vrsqrt.f32 %v113_v51  ;;  %vm120_vm3 = vweird.f32 %v113_v51 }
  0xb1   :  { %v142_v52 = vpop.eup %141 }
  0xb2   :  { %v115_v53 = vmul.f32 %v142_v52, %v113_v51  ;;  %vm121_vm2 = vweird.f32 %v142_v52 }
  0xb3   :  { %vm122_vm4 = vmor %vm120_vm3, %vm121_vm2 }
  0xb4   :  { %v116_v54 = vmul.f32 %v142_v52, %v115_v53 }
  0xb6   :  { %v117_v55 = vmul.f32 0.5, %v116_v54 }
  0xb8   :  { %v118_v56 = vsub.f32 1.5, %v117_v55 }
  0xba   :  { %v119_v58 = vmul.f32 %v142_v52, %v118_v56 }
  0xbc   :  { %v123_v59 = vsel %vm122_vm4, %v142_v52, %v119_v58 }
  0xbd   :  { %v125_v60 = vmul.f32 %v124_v57, %v123_v59 }
  0xbf   :  { %127 = vst.msk [vmem:[%s204_s3] sm:$0x7] %vm126_vm5, %v125_v60  ;;  %v129_v62 = vmul.f32 %v125_v60, %v109_v46 }
  0xc1   :  { %v130_v63 = vsub.f32 %v128_v61, %v129_v62 }
  0xc3   :  { %131 = vst.msk [vmem:[%s205_s4] sm:$0x7] %vm126_vm5, %v130_v63 }

</bundles_post_ra>
